<compile_context>
chip_gen: v6e
topology: v6e:2x2x1
jax: 0.10.0
libtpu: 0.0.40
codegen_flags: <defaults>
</compile_context>

<pallas_src>
import functools

import jax
import jax.numpy as jnp
from jax.experimental import pallas as pl
from jax.experimental.pallas import tpu as pltpu


def _round_up(x, m):
    return ((x + m - 1) // m) * m


def _make_lts_kernel(groups):
    """groups: tuple of (x_row, xp_row_start, cnt, cnt_pad) — all static ints."""

    def kernel(x_ref, wq_ref, wx_ref, o_ref, xp_ref):
        # x_ref : [n_rows_pad, tz]   (row 0 = ones when linear, then features, zeros)
        # wq_ref: [K, n_pairs_pad]   quadratic-pair weights (padded cols are zero)
        # wx_ref: [K, n_rows_pad]    linear/bias weights     (padded cols are zero)
        # o_ref : [K, tz]
        # xp_ref: [n_pairs_pad, tz]  scratch of pair products
        for (x_row, xp_off, _cnt, cnt_pad) in groups:
            # Row broadcast of x_i against the x8-sized group slice x_{i..}.
            # Starts/sizes are static; xp stores are full, aligned, unmasked.
            xi = x_ref[x_row:x_row + 1, :].astype(jnp.float32)          # (1, tz)
            xj = x_ref[x_row:x_row + cnt_pad, :].astype(jnp.float32)    # (cnt_pad, tz)
            xp_ref[xp_off:xp_off + cnt_pad, :] = xi * xj

        acc = jnp.dot(wq_ref[...], xp_ref[...],
                      preferred_element_type=jnp.float32,
                      precision=jax.lax.Precision.HIGHEST)
        acc = acc + jnp.dot(wx_ref[...], x_ref[...].astype(jnp.float32),
                            preferred_element_type=jnp.float32,
                            precision=jax.lax.Precision.HIGHEST)
        o_ref[...] = acc.astype(o_ref.dtype)

    return kernel


def learnable_tensor_square_forward(features, T, W_lin, *, linear=True, tz=2048):
    """JAX/Pallas equivalent of LearnableTensorSquare.forward.

    features : [..., n_in]
    T        : [dim_ts, n1 * n1]   (tensor-square change-of-basis, dense stand-in)
    W_lin    : [K, dim_ts]         (the matrix returned by KernelLinear())
    """
    *size, n_in = features.shape
    in_dtype = features.dtype
    x = features.reshape(-1, n_in)
    z = x.shape[0]
    k_dim = W_lin.shape[0]
    n1 = n_in + 1 if linear else n_in

    # --- parameter setup (same math as torch: (T.t() @ kernel().T).T.reshape) ---
    kernel_dense = (T.T @ W_lin.T).T.reshape(k_dim, n1, n1)          # Kd[k, i, j]
    ksym = kernel_dense + jnp.swapaxes(kernel_dense, 1, 2)

    # --- static pair-group layout: 8-aligned starts, x8 group sizes ------------
    i0 = 1 if linear else 0          # with linear=True, group 0 goes into W_x @ x
    groups = []
    off = 0
    need_rows = n1
    for i in range(i0, n1):
        cnt = n1 - i                              # pairs (i,i), (i,i+1), ..., (i,n1-1)
        cnt_pad = _round_up(cnt, 8)
        groups.append((i, off, cnt, cnt_pad))
        need_rows = max(need_rows, i + cnt_pad)
        off += cnt_pad
    n_pairs_pad = max(off, 8)                     # <=128 for n_in=10 -> 1 MXU pass
    n_rows_pad = _round_up(need_rows, 8)

    # --- weights in padded layout (zero columns for the padded slots) ----------
    wq = jnp.zeros((k_dim, n_pairs_pad), jnp.float32)
    for (i, off_i, cnt, _cnt_pad) in groups:
        diag = kernel_dense[:, i, i][:, None]                         # (K, 1)
        offd = ksym[:, i, i + 1:n1]                                   # (K, cnt-1)
        wq = wq.at[:, off_i:off_i + cnt].set(jnp.concatenate([diag, offd], axis=1))

    wx = jnp.zeros((k_dim, n_rows_pad), jnp.float32)
    if linear:
        # column 0 (ones row) = bias Kd[k,0,0]; columns j>=1 = symmetrized (0,j).
        bias = kernel_dense[:, 0, 0][:, None]
        lin_w = ksym[:, 0, 1:n1]
        wx = wx.at[:, 0:n1].set(jnp.concatenate([bias, lin_w], axis=1))

    # --- batch tiling: big tiles, but >=2 grid steps for v7x's two TCs ---------
    z128 = _round_up(max(z, 1), 128)
    tz_eff = min(int(tz), z128)
    tz_eff = max(128, (tz_eff // 128) * 128)
    if z128 >= 2 * 128 and z128 <= tz_eff:
        tz_eff = _round_up(z128 // 2, 128)
    zp = _round_up(max(z, 1), tz_eff)

    # --- channel-first input build: ones row + transpose + pad (one fusion) ----
    if linear:
        lead = jnp.concatenate([jnp.ones((1, z), in_dtype), x.T], axis=0)   # [n1, z]
    else:
        lead = x.T
    x_cf = jnp.pad(lead, ((0, n_rows_pad - n1), (0, zp - z)))               # zeros pad

    kernel_fn = _make_lts_kernel(tuple(groups))

    out_cf = pl.pallas_call(
        kernel_fn,
        out_shape=jax.ShapeDtypeStruct((k_dim, zp), in_dtype),
        grid_spec=pltpu.PrefetchScalarGridSpec(
            num_scalar_prefetch=0,
            grid=(zp // tz_eff,),
            in_specs=[
                pl.BlockSpec((n_rows_pad, tz_eff), lambda i: (0, i)),     # x tile
                pl.BlockSpec((k_dim, n_pairs_pad), lambda i: (0, 0)),     # resident W_q
                pl.BlockSpec((k_dim, n_rows_pad), lambda i: (0, 0)),      # resident W_x
            ],
            out_specs=pl.BlockSpec((k_dim, tz_eff), lambda i: (0, i)),
            scratch_shapes=[pltpu.VMEM((n_pairs_pad, tz_eff), jnp.float32)],
        ),
        compiler_params=pltpu.CompilerParams(
            dimension_semantics=("parallel",)),
    )(x_cf, wq, wx)

    # slice + transpose + reshape: single output fusion under jit
    out = out_cf[:, :z].T.reshape(*size, k_dim)
    return out


if __name__ == "__main__":
    key = jax.random.PRNGKey(0)
    k_feat, k_T, k_W = jax.random.split(key, 3)

    # Rs_in  = [(4, 0, 1), (2, 1, 1)]  -> dim(Rs_in)  = 4*1 + 2*3 = 10
    # Rs_out = [(8, 0, 1), (4, 1, 1)]  -> dim(Rs_out) = 8*1 + 4*3 = 20
    n_in = 10
    k_out = 20
    linear = True
    n1 = n_in + 1 if linear else n_in
    dim_ts = 48   # stand-in for dim(Rs_ts) from rs.tensor_square(...)
    # TODO(synk): rs.tensor_square / o3.selection_rule (Wigner-3j) construction of
    # the sparse buffer T and KernelLinear's per-irrep block weight structure have
    # no Pallas equivalent; they are replaced by deterministic dense buffers of
    # the same shapes (forward compute semantics are unchanged).

    features = jax.random.normal(k_feat, (2, 8, n_in), dtype=jnp.float32)
    T = jax.random.normal(k_T, (dim_ts, n1 * n1), dtype=jnp.float32) / n1
    W_lin = jax.random.normal(k_W, (k_out, dim_ts), dtype=jnp.float32) / jnp.sqrt(dim_ts)

    fwd = jax.jit(learnable_tensor_square_forward)
    out = jax.block_until_ready(fwd(features, T, W_lin))

    # Pure-JAX reference of the same forward pass for a correctness check.
    x_ref = features.reshape(-1, n_in)
    x_ref = jnp.concatenate([jnp.ones((x_ref.shape[0], 1), x_ref.dtype), x_ref], axis=1)
    kernel_dense = (T.T @ W_lin.T).T.reshape(k_out, n1, n1)
    ref = jnp.einsum('kij,zi,zj->zk', kernel_dense, x_ref, x_ref,
                     precision=jax.lax.Precision.HIGHEST).reshape(2, 8, k_out)

    assert out.shape == (2, 8, k_out), out.shape
    max_err = float(jnp.max(jnp.abs(out - ref)))
    assert jnp.allclose(out, ref, atol=1e-3, rtol=1e-3), max_err
    print("KERNEL_OK")
</pallas_src>

<mosaic_0001>
module attributes {stable_mosaic.version = 11 : i64} {
  func.func @kernel(%arg0: i32, %arg1: memref<24x128xf32, #tpu.memory_space<vmem>>, %arg2: memref<20x96xf32, #tpu.memory_space<vmem>>, %arg3: memref<20x24xf32, #tpu.memory_space<vmem>>, %arg4: memref<20x128xf32, #tpu.memory_space<vmem>>, %arg5: memref<96x128xf32, #tpu.memory_space<vmem>>) attributes {dimension_semantics = [#tpu.dimension_semantics<parallel>], iteration_bounds = array<i64: 1>, scalar_prefetch = 0 : i64, scratch_operands = 1 : i64, tpu.core_type = #tpu.core_type<tc>, window_params = [{transform_indices = @transform_0, window_bounds = array<i64: 24, 128>}, {pipeline_mode = #tpu.pipeline_mode<synchronous>, transform_indices = @transform_1, window_bounds = array<i64: 20, 96>}, {pipeline_mode = #tpu.pipeline_mode<synchronous>, transform_indices = @transform_2, window_bounds = array<i64: 20, 24>}, {transform_indices = @transform_3, window_bounds = array<i64: 20, 128>}]} {
    %c1 = arith.constant 1 : index
    %c0 = arith.constant 0 : index
    %0 = vector.load %arg1[%c1, %c0] : memref<24x128xf32, #tpu.memory_space<vmem>>, vector<1x128xf32>
    %c1_0 = arith.constant 1 : index
    %c0_1 = arith.constant 0 : index
    %1 = vector.load %arg1[%c1_0, %c0_1] : memref<24x128xf32, #tpu.memory_space<vmem>>, vector<16x128xf32>
    %2 = vector.broadcast %0 : vector<1x128xf32> to vector<16x128xf32>
    %3 = arith.mulf %2, %1 : vector<16x128xf32>
    %c0_2 = arith.constant 0 : index
    %c0_3 = arith.constant 0 : index
    %4 = vector.load %arg5[%c0_2, %c0_3] : memref<96x128xf32, #tpu.memory_space<vmem>>, vector<16x128xf32>
    tpu.vector_store %arg5[%c0_2, %c0_3], %3 {strides = array<i32>} : memref<96x128xf32, #tpu.memory_space<vmem>>, vector<16x128xf32>,
    %c2 = arith.constant 2 : index
    %c0_4 = arith.constant 0 : index
    %5 = vector.load %arg1[%c2, %c0_4] : memref<24x128xf32, #tpu.memory_space<vmem>>, vector<1x128xf32>
    %c2_5 = arith.constant 2 : index
    %c0_6 = arith.constant 0 : index
    %6 = vector.load %arg1[%c2_5, %c0_6] : memref<24x128xf32, #tpu.memory_space<vmem>>, vector<16x128xf32>
    %7 = vector.broadcast %5 : vector<1x128xf32> to vector<16x128xf32>
    %8 = arith.mulf %7, %6 : vector<16x128xf32>
    %c16 = arith.constant 16 : index
    %c0_7 = arith.constant 0 : index
    %9 = vector.load %arg5[%c16, %c0_7] : memref<96x128xf32, #tpu.memory_space<vmem>>, vector<16x128xf32>
    tpu.vector_store %arg5[%c16, %c0_7], %8 {strides = array<i32>} : memref<96x128xf32, #tpu.memory_space<vmem>>, vector<16x128xf32>,
    %c3 = arith.constant 3 : index
    %c0_8 = arith.constant 0 : index
    %10 = vector.load %arg1[%c3, %c0_8] : memref<24x128xf32, #tpu.memory_space<vmem>>, vector<1x128xf32>
    %c3_9 = arith.constant 3 : index
    %c0_10 = arith.constant 0 : index
    %11 = vector.load %arg1[%c3_9, %c0_10] : memref<24x128xf32, #tpu.memory_space<vmem>>, vector<8x128xf32>
    %12 = vector.broadcast %10 : vector<1x128xf32> to vector<8x128xf32>
    %13 = arith.mulf %12, %11 : vector<8x128xf32>
    %c32 = arith.constant 32 : index
    %c0_11 = arith.constant 0 : index
    %14 = vector.load %arg5[%c32, %c0_11] : memref<96x128xf32, #tpu.memory_space<vmem>>, vector<8x128xf32>
    tpu.vector_store %arg5[%c32, %c0_11], %13 {strides = array<i32>} : memref<96x128xf32, #tpu.memory_space<vmem>>, vector<8x128xf32>,
    %c4 = arith.constant 4 : index
    %c0_12 = arith.constant 0 : index
    %15 = vector.load %arg1[%c4, %c0_12] : memref<24x128xf32, #tpu.memory_space<vmem>>, vector<1x128xf32>
    %c4_13 = arith.constant 4 : index
    %c0_14 = arith.constant 0 : index
    %16 = vector.load %arg1[%c4_13, %c0_14] : memref<24x128xf32, #tpu.memory_space<vmem>>, vector<8x128xf32>
    %17 = vector.broadcast %15 : vector<1x128xf32> to vector<8x128xf32>
    %18 = arith.mulf %17, %16 : vector<8x128xf32>
    %c40 = arith.constant 40 : index
    %c0_15 = arith.constant 0 : index
    %19 = vector.load %arg5[%c40, %c0_15] : memref<96x128xf32, #tpu.memory_space<vmem>>, vector<8x128xf32>
    tpu.vector_store %arg5[%c40, %c0_15], %18 {strides = array<i32>} : memref<96x128xf32, #tpu.memory_space<vmem>>, vector<8x128xf32>,
    %c5 = arith.constant 5 : index
    %c0_16 = arith.constant 0 : index
    %20 = vector.load %arg1[%c5, %c0_16] : memref<24x128xf32, #tpu.memory_space<vmem>>, vector<1x128xf32>
    %c5_17 = arith.constant 5 : index
    %c0_18 = arith.constant 0 : index
    %21 = vector.load %arg1[%c5_17, %c0_18] : memref<24x128xf32, #tpu.memory_space<vmem>>, vector<8x128xf32>
    %22 = vector.broadcast %20 : vector<1x128xf32> to vector<8x128xf32>
    %23 = arith.mulf %22, %21 : vector<8x128xf32>
    %c48 = arith.constant 48 : index
    %c0_19 = arith.constant 0 : index
    %24 = vector.load %arg5[%c48, %c0_19] : memref<96x128xf32, #tpu.memory_space<vmem>>, vector<8x128xf32>
    tpu.vector_store %arg5[%c48, %c0_19], %23 {strides = array<i32>} : memref<96x128xf32, #tpu.memory_space<vmem>>, vector<8x128xf32>,
    %c6 = arith.constant 6 : index
    %c0_20 = arith.constant 0 : index
    %25 = vector.load %arg1[%c6, %c0_20] : memref<24x128xf32, #tpu.memory_space<vmem>>, vector<1x128xf32>
    %c6_21 = arith.constant 6 : index
    %c0_22 = arith.constant 0 : index
    %26 = vector.load %arg1[%c6_21, %c0_22] : memref<24x128xf32, #tpu.memory_space<vmem>>, vector<8x128xf32>
    %27 = vector.broadcast %25 : vector<1x128xf32> to vector<8x128xf32>
    %28 = arith.mulf %27, %26 : vector<8x128xf32>
    %c56 = arith.constant 56 : index
    %c0_23 = arith.constant 0 : index
    %29 = vector.load %arg5[%c56, %c0_23] : memref<96x128xf32, #tpu.memory_space<vmem>>, vector<8x128xf32>
    tpu.vector_store %arg5[%c56, %c0_23], %28 {strides = array<i32>} : memref<96x128xf32, #tpu.memory_space<vmem>>, vector<8x128xf32>,
    %c7 = arith.constant 7 : index
    %c0_24 = arith.constant 0 : index
    %30 = vector.load %arg1[%c7, %c0_24] : memref<24x128xf32, #tpu.memory_space<vmem>>, vector<1x128xf32>
    %c7_25 = arith.constant 7 : index
    %c0_26 = arith.constant 0 : index
    %31 = vector.load %arg1[%c7_25, %c0_26] : memref<24x128xf32, #tpu.memory_space<vmem>>, vector<8x128xf32>
    %32 = vector.broadcast %30 : vector<1x128xf32> to vector<8x128xf32>
    %33 = arith.mulf %32, %31 : vector<8x128xf32>
    %c64 = arith.constant 64 : index
    %c0_27 = arith.constant 0 : index
    %34 = vector.load %arg5[%c64, %c0_27] : memref<96x128xf32, #tpu.memory_space<vmem>>, vector<8x128xf32>
    tpu.vector_store %arg5[%c64, %c0_27], %33 {strides = array<i32>} : memref<96x128xf32, #tpu.memory_space<vmem>>, vector<8x128xf32>,
    %c8 = arith.constant 8 : index
    %c0_28 = arith.constant 0 : index
    %35 = vector.load %arg1[%c8, %c0_28] : memref<24x128xf32, #tpu.memory_space<vmem>>, vector<1x128xf32>
    %c8_29 = arith.constant 8 : index
    %c0_30 = arith.constant 0 : index
    %36 = vector.load %arg1[%c8_29, %c0_30] : memref<24x128xf32, #tpu.memory_space<vmem>>, vector<8x128xf32>
    %37 = vector.broadcast %35 : vector<1x128xf32> to vector<8x128xf32>
    %38 = arith.mulf %37, %36 : vector<8x128xf32>
    %c72 = arith.constant 72 : index
    %c0_31 = arith.constant 0 : index
    %39 = vector.load %arg5[%c72, %c0_31] : memref<96x128xf32, #tpu.memory_space<vmem>>, vector<8x128xf32>
    tpu.vector_store %arg5[%c72, %c0_31], %38 {strides = array<i32>} : memref<96x128xf32, #tpu.memory_space<vmem>>, vector<8x128xf32>,
    %c9 = arith.constant 9 : index
    %c0_32 = arith.constant 0 : index
    %40 = vector.load %arg1[%c9, %c0_32] : memref<24x128xf32, #tpu.memory_space<vmem>>, vector<1x128xf32>
    %c9_33 = arith.constant 9 : index
    %c0_34 = arith.constant 0 : index
    %41 = vector.load %arg1[%c9_33, %c0_34] : memref<24x128xf32, #tpu.memory_space<vmem>>, vector<8x128xf32>
    %42 = vector.broadcast %40 : vector<1x128xf32> to vector<8x128xf32>
    %43 = arith.mulf %42, %41 : vector<8x128xf32>
    %c80 = arith.constant 80 : index
    %c0_35 = arith.constant 0 : index
    %44 = vector.load %arg5[%c80, %c0_35] : memref<96x128xf32, #tpu.memory_space<vmem>>, vector<8x128xf32>
    tpu.vector_store %arg5[%c80, %c0_35], %43 {strides = array<i32>} : memref<96x128xf32, #tpu.memory_space<vmem>>, vector<8x128xf32>,
    %c10 = arith.constant 10 : index
    %c0_36 = arith.constant 0 : index
    %45 = vector.load %arg1[%c10, %c0_36] : memref<24x128xf32, #tpu.memory_space<vmem>>, vector<1x128xf32>
    %c10_37 = arith.constant 10 : index
    %c0_38 = arith.constant 0 : index
    %46 = vector.load %arg1[%c10_37, %c0_38] : memref<24x128xf32, #tpu.memory_space<vmem>>, vector<8x128xf32>
    %47 = vector.broadcast %45 : vector<1x128xf32> to vector<8x128xf32>
    %48 = arith.mulf %47, %46 : vector<8x128xf32>
    %c88 = arith.constant 88 : index
    %c0_39 = arith.constant 0 : index
    %49 = vector.load %arg5[%c88, %c0_39] : memref<96x128xf32, #tpu.memory_space<vmem>>, vector<8x128xf32>
    tpu.vector_store %arg5[%c88, %c0_39], %48 {strides = array<i32>} : memref<96x128xf32, #tpu.memory_space<vmem>>, vector<8x128xf32>,
    %c0_40 = arith.constant 0 : index
    %c0_41 = arith.constant 0 : index
    %50 = vector.load %arg2[%c0_40, %c0_41] : memref<20x96xf32, #tpu.memory_space<vmem>>, vector<20x96xf32>
    %c0_42 = arith.constant 0 : index
    %c0_43 = arith.constant 0 : index
    %51 = vector.load %arg5[%c0_42, %c0_43] : memref<96x128xf32, #tpu.memory_space<vmem>>, vector<96x128xf32>
    %cst = arith.constant dense<0.000000e+00> : vector<20x128xf32>
    %52 = tpu.matmul %50, %51, %cst {dimension_numbers = #tpu.dot_dimension_numbers<[1], [0], [0], [1], [0, 0, 1, 1], [], []>, precision = #tpu.contract_precision<fp32>} : vector<20x96xf32>, vector<96x128xf32>, vector<20x128xf32> -> vector<20x128xf32>
    %c0_44 = arith.constant 0 : index
    %c0_45 = arith.constant 0 : index
    %53 = vector.load %arg3[%c0_44, %c0_45] : memref<20x24xf32, #tpu.memory_space<vmem>>, vector<20x24xf32>
    %c0_46 = arith.constant 0 : index
    %c0_47 = arith.constant 0 : index
    %54 = vector.load %arg1[%c0_46, %c0_47] : memref<24x128xf32, #tpu.memory_space<vmem>>, vector<24x128xf32>
    %cst_48 = arith.constant dense<0.000000e+00> : vector<20x128xf32>
    %55 = tpu.matmul %53, %54, %cst_48 {dimension_numbers = #tpu.dot_dimension_numbers<[1], [0], [0], [1], [0, 0, 1, 1], [], []>, precision = #tpu.contract_precision<fp32>} : vector<20x24xf32>, vector<24x128xf32>, vector<20x128xf32> -> vector<20x128xf32>
    %56 = arith.addf %52, %55 : vector<20x128xf32>
    %c0_49 = arith.constant 0 : index
    %c0_50 = arith.constant 0 : index
    %57 = vector.load %arg4[%c0_49, %c0_50] : memref<20x128xf32, #tpu.memory_space<vmem>>, vector<20x128xf32>
    tpu.vector_store %arg4[%c0_49, %c0_50], %56 {strides = array<i32>} : memref<20x128xf32, #tpu.memory_space<vmem>>, vector<20x128xf32>,
    return
  }
  func.func @transform_0(%arg0: i32) -> (i32, i32) {
    %c0_i32 = arith.constant 0 : i32
    %c0_i32_0 = arith.constant 0 : i32
    return %c0_i32, %arg0 : i32, i32
  }
  func.func @transform_1(%arg0: i32) -> (i32, i32) {
    %c0_i32 = arith.constant 0 : i32
    %c0_i32_0 = arith.constant 0 : i32
    %c0_i32_1 = arith.constant 0 : i32
    return %c0_i32, %c0_i32_0 : i32, i32
  }
  func.func @transform_2(%arg0: i32) -> (i32, i32) {
    %c0_i32 = arith.constant 0 : i32
    %c0_i32_0 = arith.constant 0 : i32
    %c0_i32_1 = arith.constant 0 : i32
    return %c0_i32, %c0_i32_0 : i32, i32
  }
  func.func @transform_3(%arg0: i32) -> (i32, i32) {
    %c0_i32 = arith.constant 0 : i32
    %c0_i32_0 = arith.constant 0 : i32
    return %c0_i32, %arg0 : i32, i32
  }
}

</mosaic_0001>

<bundles_post_ra>
// kernel: learnable_tensor_square_forward.1
= control target key start
LH: loop header
LB: loop body
LE: loop exit
PB: predicated region body
PF: predicated region fallthrough
CT: control target
= control target key end

     0   :  { %vm121_vm0 = vcmask 195584   ;;  %v1807_v0 = vmov 0.0   ;;  %vm1808_vm1 = vmmov 0   ;;  %vm689_vm2 = vcmask 785408   ;;  %s2418_s0 = inlined_call_operand.vmem [shape: f32[24,128], index: 0, kind: input, shape index: {}]   ;;  %s2419_s2 = inlined_call_operand.vmem [shape: f32[20,24], index: 2, kind: input, shape index: {}]   ;;  %s2420_s1 = inlined_call_operand.vmem [shape: f32[20,96], index: 1, kind: input, shape index: {}]   ;;  %s2421_s3 = inlined_call_operand.vmem [shape: f32[20,128], index: 3, kind: output, shape index: {}]  }
   0x1   :  { %1517 = vmatprep.subr.mxu0 %v1807_v0  ;;  %v120_v1 = vld [vmem:[%s2418_s0 + $0x10] sm:$0xff]  ;;  %v1836_v2 = vld [vmem:[%s2418_s0 + $0x8] sm:$0xff]  ;;  %1532 = vmatprep.subr.mxu1 %v1807_v0  ;;  %v118_v3 = vld [vmem:[%s2418_s0] sm:$0xff] }
   0x2   :  { %v1842_v4 = vand.u32 4294901760, %v120_v1  ;;  %v1845_v5 = vand.u32 4294901760, %v1836_v2  ;;  %v1847_v6 = vand.u32 4294901760, %v118_v3  ;;  %1523 = vmatprep.mubr.msk.f32.mxu0 %vm1808_vm1, %v1807_v0  ;;  %v115_v7 = vld [vmem:[%s2419_s2] sm:$0xff]  ;;  %1538 = vmatprep.mubr.msk.f32.mxu1 %vm1808_vm1, %v1807_v0  ;;  %v116_v8 = vld [vmem:[%s2419_s2 + $0x8] sm:$0xff] }
   0x3   :  { %v123_v9 = vsel %vm121_vm0, %v115_v7, 0  ;;  %v126_v10 = vsel %vm121_vm0, %v116_v8, 0  ;;  %v117_v11 = vld [vmem:[%s2419_s2 + $0x10] sm:$0xf]  ;;  %v1390_v39 = vld [vmem:[%s2418_s0 + $0xa] ss:$0 sm:$0xff] }
   0x4   :  { %1518 = vmatpush3.msra.mxu0 %v1842_v4  ;;  %v1866_v12 = vsub.f32 %v120_v1, %v1842_v4  ;;  %v1868_v13 = vand.u32 4294901760, %v123_v9  ;;  %v1872_v14 = vsub.f32 %v1836_v2, %v1845_v5  ;;  %v1875_v15 = vsub.f32 %v118_v3, %v1847_v6  ;;  %v1933_v40 = vld [vmem:[%s2418_s0 + $0xa] sm:$0xff]  ;;  %v1389_v42 = vld [vmem:[%s2418_s0 + $0x9] ss:$0 sm:$0xff]  ;;  %v1388_v46 = vld [vmem:[%s2418_s0 + $0x8] ss:$0 sm:$0xff] }
   0x5   :  { %1519 = vmatprep.subr.mxu0 %v1807_v0  ;;  %v1878_v16 = vand.u32 4294901760, %v126_v10  ;;  %v129_v17 = vsel %vm121_vm0, %v117_v11, 0  ;;  %v1945_v43 = vld [vmem:[%s2418_s0 + $0x9] sm:$0xff]  ;;  %v98_v44 = vmul.f32 %v1390_v39, %v1933_v40  ;;  %v1387_v48 = vld [vmem:[%s2418_s0 + $0x7] ss:$0 sm:$0xff]  ;;  %v82_v51 = vmul.f32 %v1388_v46, %v1836_v2 }
   0x6   :  { %1520 = vmatpush3.msra.mxu0 %v1845_v5  ;;  %v258_v18 = vand.u32 4294901760, %v1866_v12  ;;  %v1884_v19 = vsub.f32 %v123_v9, %v1868_v13  ;;  %v265_v20 = vand.u32 4294901760, %v1872_v14  ;;  %v272_v21 = vand.u32 4294901760, %v1875_v15  ;;  %v69_v49 = vld [vmem:[%s2418_s0 + $0x7] sm:$0xff]  ;;  %v1386_v54 = vld [vmem:[%s2418_s0 + $0x6] ss:$0 sm:$0xff] }
   0x7   :  { %1521 = vmatprep.subr.mxu0 %v1807_v0  ;;  %v1890_v22 = vsub.f32 %v126_v10, %v1878_v16  ;;  %v1892_v23 = vand.u32 4294901760, %v129_v17  ;;  %v90_v45 = vmul.f32 %v1389_v42, %v1945_v43  ;;  %v1964_v47 = vand.u32 4294901760, %v98_v44  ;;  %v61_v55 = vld [vmem:[%s2418_s0 + $0x6] sm:$0xff]  ;;  %v1385_v58 = vld [vmem:[%s2418_s0 + $0x5] ss:$0 sm:$0xff] }
   0x8   :  { %1522 = vmatpush3.msra.mxu0 %v1847_v6  ;;  %v259_v24 = vsub.f32 %v1866_v12, %v258_v18  ;;  %v201_v25 = vand.u32 4294901760, %v1884_v19  ;;  %v266_v26 = vsub.f32 %v1872_v14, %v265_v20  ;;  %v273_v27 = vsub.f32 %v1875_v15, %v272_v21  ;;  %v53_v59 = vld [vmem:[%s2418_s0 + $0x5] sm:$0xff]  ;;  %v1384_v63 = vld [vmem:[%s2418_s0 + $0x4] ss:$0 sm:$0xff]  ;;  %v1383_v7 = vld [vmem:[%s2418_s0 + $0x3] ss:$0 sm:$0xff] }
   0x9   :  { %1547 = vmatprep.subr.mxu0 %v1807_v0  ;;  %v211_v28 = vand.u32 4294901760, %v1890_v22  ;;  %v1908_v29 = vsub.f32 %v129_v17, %v1892_v23  ;;  %v1976_v50 = vand.u32 4294901760, %v90_v45  ;;  %v1987_v52 = vsub.f32 %v98_v44, %v1964_v47  ;;  %v45_v1 = vld [vmem:[%s2418_s0 + $0x4] sm:$0xff] }
   0xa   :  { %v260_v30 = vand.u32 4294901760, %v259_v24  ;;  %v202_v31 = vsub.f32 %v1884_v19, %v201_v25  ;;  %v267_v32 = vand.u32 4294901760, %v266_v26  ;;  %v274_v36 = vand.u32 4294901760, %v273_v27  ;;  %v37_v8 = vld [vmem:[%s2418_s0 + $0x3] sm:$0xff] }
   0xb   :  { %v212_v33 = vsub.f32 %v1890_v22, %v211_v28  ;;  %v221_v34 = vand.u32 4294901760, %v1908_v29  ;;  %v74_v53 = vmul.f32 %v1387_v48, %v69_v49  ;;  %v2001_v56 = vsub.f32 %v90_v45, %v1976_v50 }
   0xc   :  { %1533 = vmatpush3.msra.mxu1 %v260_v30  ;;  %v203_v35 = vand.u32 4294901760, %v202_v31  ;;  %v2003_v57 = vand.u32 4294901760, %v82_v51  ;;  %v66_v60 = vmul.f32 %v1386_v54, %v61_v55  ;;  %v817_v61 = vand.u32 4294901760, %v1987_v52 }
   0xd   :  { %1534 = vmatprep.subr.mxu1 %v1807_v0  ;;  %v213_v37 = vand.u32 4294901760, %v212_v33  ;;  %v222_v38 = vsub.f32 %v1908_v29, %v221_v34  ;;  %v2019_v62 = vand.u32 4294901760, %v74_v53  ;;  %v58_v2 = vmul.f32 %v1385_v58, %v53_v59 }
   0xe   :  { %1524 = vmatmul.mubr.f32.vlgmr.msra.gmra.mxu0 %v203_v35  ;;  %1535 = vmatpush3.msra.mxu1 %v267_v32  ;;  %v2033_v3 = vsub.f32 %v82_v51, %v2003_v57  ;;  %v2045_v9 = vand.u32 4294901760, %v66_v60  ;;  %v50_v10 = vmul.f32 %v1384_v63, %v45_v1  ;;  %v818_v11 = vsub.f32 %v1987_v52, %v817_v61  ;;  %v15_v35 = vld [vmem:[%s2418_s0 + $0x1] sm:$0xff] }
   0xf   :  { %1536 = vmatprep.subr.mxu1 %v1807_v0  ;;  %1526 = vmatprep.mubr.msk.f32.mxu0 %vm1808_vm1, %v1807_v0  ;;  %v223_v41 = vand.u32 4294901760, %v222_v38 }
  0x10   :  { %1537 = vmatpush3.msra.mxu1 %v274_v36  ;;  %1548 = vmatpush3.msra.mxu0 %v1866_v12  ;;  %v2055_v12 = vsub.f32 %v74_v53, %v2019_v62  ;;  %v819_v24 = vand.u32 4294901760, %v818_v11 }
  0x11   :  { %1539 = vmatmul.mubr.f32.vlgmr.msra.gmra.mxu1 %v1868_v13  ;;  %1562 = vmatprep.subr.mxu1 %v1807_v0 }
  0x12   :  { %1527 = vmatmul.mubr.f32.gmra.mxu0 %v213_v37  ;;  %1563 = vmatpush3.msra.mxu1 %v1842_v4 }
  0x13   :  { %1549 = vmatprep.subr.mxu0 %v1807_v0  ;;  %1529 = vmatprep.mubr.msk.f32.mxu0 %vm1808_vm1, %v1807_v0 }
  0x14   :  { %1541 = vmatprep.mubr.msk.f32.mxu1 %vm1808_vm1, %v1807_v0  ;;  %1550 = vmatpush3.msra.mxu0 %v1872_v14  ;;  %v2063_v14 = vand.u32 4294901760, %v58_v2 }
  0x15   :  { %1542 = vmatmul.mubr.f32.gmra.mxu1 %v1878_v16  ;;  %1564 = vmatprep.subr.mxu1 %v1807_v0 }
  0x16   :  { %1530 = vmatmul.mubr.f32.gmra.mxu0 %v223_v41  ;;  %1565 = vmatpush3.msra.mxu1 %v1845_v5  ;;  %v2093_v26 = vsub.f32 %v58_v2, %v2063_v14 }
  0x17   :  { %1551 = vmatprep.subr.mxu0 %v1807_v0  ;;  %1544 = vmatprep.mubr.msk.f32.mxu1 %vm1808_vm1, %v1807_v0 }
  0x18   :  { %1552 = vmatpush3.msra.mxu0 %v1875_v15  ;;  %1553 = vmatprep.mubr.msk.f32.mxu0 %vm1808_vm1, %v1807_v0  ;;  %v42_v15 = vmul.f32 %v1383_v7, %v37_v8  ;;  %v852_v39 = vand.u32 4294901760, %v2093_v26  ;;  %v102_v8 = vld [vmem:[%s2420_s1 + $0x10] sm:$0xf] }
  0x19   :  { %1545 = vmatmul.mubr.f32.gmra.mxu1 %v1892_v23  ;;  %1566 = vmatprep.subr.mxu1 %v1807_v0 }
  0x1a   :  { %1554 = vmatmul.mubr.f32.vlgmr.msra.gmra.mxu0 %v1884_v19  ;;  %1567 = vmatpush3.msra.mxu1 %v1847_v6  ;;  %v2074_v19 = vsub.f32 %v66_v60, %v2045_v9  ;;  %v2095_v27 = vand.u32 4294901760, %v42_v15  ;;  %v853_v53 = vsub.f32 %v2093_v26, %v852_v39 }
  0x1b   :  { %1577 = vmatprep.subr.mxu0 %v1807_v0  ;;  %1556 = vmatprep.mubr.msk.f32.mxu0 %vm1808_vm1, %v1807_v0 }
  0x1c   :  { %1568 = vmatprep.mubr.msk.f32.mxu1 %vm1808_vm1, %v1807_v0  ;;  %1578 = vmatpush3.msra.mxu0 %v258_v18  ;;  %v831_v18 = vand.u32 4294901760, %v2033_v3  ;;  %v845_v33 = vand.u32 4294901760, %v2074_v19  ;;  %v2125_v38 = vsub.f32 %v42_v15, %v2095_v27 }
  0x1d   :  { %1569 = vmatmul.mubr.f32.vlgmr.msra.gmra.mxu1 %v201_v25  ;;  %1592 = vmatprep.subr.mxu1 %v1807_v0  ;;  %v838_v25 = vand.u32 4294901760, %v2055_v12 }
  0x1e   :  { %1557 = vmatmul.mubr.f32.gmra.mxu0 %v1890_v22  ;;  %1593 = vmatpush3.msra.mxu1 %v1842_v4  ;;  %v824_v4 = vand.u32 4294901760, %v2001_v56  ;;  %v26_v22 = vld [vmem:[%s2418_s0 + $0x2] sm:$0xff]  ;;  %v832_v30 = vsub.f32 %v2033_v3, %v831_v18  ;;  %v846_v45 = vsub.f32 %v2074_v19, %v845_v33  ;;  %v866_v54 = vand.u32 4294901760, %v2125_v38 }
  0x1f   :  { %1579 = vmatprep.subr.mxu0 %v1807_v0  ;;  %1559 = vmatprep.mubr.msk.f32.mxu0 %vm1808_vm1, %v1807_v0 }
  0x20   :  { %1571 = vmatprep.mubr.msk.f32.mxu1 %vm1808_vm1, %v1807_v0  ;;  %1580 = vmatpush3.msra.mxu0 %v265_v20  ;;  %v825_v17 = vsub.f32 %v2001_v56, %v824_v4  ;;  %v2076_v20 = vand.u32 4294901760, %v50_v10  ;;  %v867_v11 = vsub.f32 %v2125_v38, %v866_v54 }
  0x21   :  { %1572 = vmatmul.mubr.f32.gmra.mxu1 %v211_v28  ;;  %1594 = vmatprep.subr.mxu1 %v1807_v0  ;;  %v1381_v28 = vld [vmem:[%s2418_s0 + $0x1] ss:$0 sm:$0xff] }
  0x22   :  { %1560 = vmatmul.mubr.f32.gmra.mxu0 %v1908_v29  ;;  %1581 = vmatprep.subr.mxu0 %v1807_v0  ;;  %v826_v29 = vand.u32 4294901760, %v825_v17  ;;  %v2108_v32 = vsub.f32 %v50_v10, %v2076_v20  ;;  %v22_v37 = vmul.f32 %v1381_v28, %v1945_v43  ;;  %v21_v42 = vmul.f32 %v1381_v28, %v15_v35  ;;  %v101_v43 = vld [vmem:[%s2420_s1 + $0x8] sm:$0xff] }
  0x23   :  { %1595 = vmatpush3.msra.mxu1 %v1845_v5  ;;  %1582 = vmatpush3.msra.mxu0 %v272_v21  ;;  %v1382_v5 = vld [vmem:[%s2418_s0 + $0x2] ss:$0 sm:$0xff]  ;;  %v694_v55 = vsel %vm689_vm2, %v101_v43, 0  ;;  %v854_v10 = vand.u32 4294901760, %v853_v53  ;;  %v868_v28 = vand.u32 4294901760, %v867_v11 }
  0x24   :  { %1574 = vmatprep.mubr.msk.f32.mxu1 %vm1808_vm1, %v1807_v0  ;;  %1583 = vmatprep.mubr.msk.f32.mxu0 %vm1808_vm1, %v1807_v0  ;;  %v33_v21 = vmul.f32 %v1382_v5, %v1933_v40  ;;  %v32_v31 = vmul.f32 %v1382_v5, %v26_v22  ;;  %v833_v40 = vand.u32 4294901760, %v832_v30  ;;  %v859_v48 = vand.u32 4294901760, %v2108_v32 }
  0x25   :  { %1607 = vmatprep.subr.mxu0 %v1807_v0  ;;  %1575 = vmatmul.mubr.f32.gmra.mxu1 %v221_v34  ;;  %v2149_v51 = vand.u32 4294901760, %v22_v37  ;;  %v2162_v59 = vand.u32 4294901760, %v21_v42  ;;  %v2177_v7 = vand.u32 4294901760, %v694_v55 }
  0x26   :  { %1584 = vmatmul.mubr.f32.vlgmr.msra.gmra.mxu0 %v1868_v13  ;;  %1596 = vmatprep.subr.mxu1 %v1807_v0  ;;  %v2111_v34 = vand.u32 4294901760, %v33_v21  ;;  %v2129_v41 = vand.u32 4294901760, %v32_v31  ;;  %v860_v63 = vsub.f32 %v2108_v32, %v859_v48 }
  0x27   :  { %1608 = vmatpush3.msra.mxu0 %v1964_v47  ;;  %1597 = vmatpush3.msra.mxu1 %v1847_v6  ;;  %v100_v6 = vld [vmem:[%s2420_s1] sm:$0xff]  ;;  %v2175_v2 = vsub.f32 %v22_v37, %v2149_v51  ;;  %v2191_v5 = vsub.f32 %v21_v42, %v2162_v59 }
  0x28   :  { %1609 = vmatprep.subr.mxu0 %v1807_v0  ;;  %1586 = vmatprep.mubr.msk.f32.mxu0 %vm1808_vm1, %v1807_v0  ;;  %v691_v36 = vsel %vm689_vm2, %v100_v6, 0  ;;  %v2144_v46 = vsub.f32 %v33_v21, %v2111_v34  ;;  %v2160_v58 = vsub.f32 %v32_v31, %v2129_v41  ;;  %v861_v21 = vand.u32 4294901760, %v860_v63 }
  0x29   :  { %1610 = vmatpush3.msra.mxu0 %v1976_v50  ;;  %1598 = vmatprep.mubr.msk.f32.mxu1 %vm1808_vm1, %v1807_v0  ;;  %v2131_v44 = vand.u32 4294901760, %v691_v36  ;;  %v2204_v6 = vsub.f32 %v694_v55, %v2177_v7  ;;  %v894_v31 = vand.u32 4294901760, %v2191_v5 }
  0x2a   :  { %1611 = vmatprep.subr.mxu0 %v1807_v0  ;;  %1640 = vmatprep.subr.mxu1 %v1807_v0  ;;  %v873_v1 = vand.u32 4294901760, %v2144_v46  ;;  %v880_v15 = vand.u32 4294901760, %v2160_v58 }
  0x2b   :  { %1587 = vmatmul.mubr.f32.gmra.mxu0 %v1878_v16  ;;  %1599 = vmatmul.mubr.f32.vlgmr.msra.gmra.mxu1 %v1868_v13  ;;  %v839_v13 = vsub.f32 %v2055_v12, %v838_v25  ;;  %v2165_v60 = vsub.f32 %v691_v36, %v2131_v44  ;;  %v788_v37 = vand.u32 4294901760, %v2204_v6  ;;  %v895_v43 = vsub.f32 %v2191_v5, %v894_v31 }
  0x2c   :  { %1612 = vmatpush3.msra.mxu0 %v2003_v57  ;;  %1641 = vmatpush3.msra.mxu1 %v819_v24  ;;  %v874_v22 = vsub.f32 %v2144_v46, %v873_v1  ;;  %v697_v24 = vsel %vm689_vm2, %v102_v8, 0 }
  0x2d   :  { %1613 = vmatprep.subr.mxu0 %v1807_v0  ;;  %1642 = vmatprep.subr.mxu1 %v1807_v0  ;;  %v840_v49 = vand.u32 4294901760, %v839_v13  ;;  %v778_v17 = vand.u32 4294901760, %v2165_v60  ;;  %v2216_v35 = vand.u32 4294901760, %v697_v24  ;;  %v789_v53 = vsub.f32 %v2204_v6, %v788_v37 }
  0x2e   :  { %1614 = vmatpush3.msra.mxu0 %v2019_v62  ;;  %1643 = vmatpush3.msra.mxu1 %v826_v29  ;;  %v881_v29 = vsub.f32 %v2160_v58, %v880_v15  ;;  %v875_v36 = vand.u32 4294901760, %v874_v22  ;;  %v896_v55 = vand.u32 4294901760, %v895_v43 }
  0x2f   :  { %1589 = vmatprep.mubr.msk.f32.mxu0 %vm1808_vm1, %v1807_v0  ;;  %1601 = vmatprep.mubr.msk.f32.mxu1 %vm1808_vm1, %v1807_v0  ;;  %v779_v30 = vsub.f32 %v2165_v60, %v778_v17  ;;  %v790_v63 = vand.u32 4294901760, %v789_v53 }
  0x30   :  { %1615 = vmatprep.subr.mxu0 %v1807_v0  ;;  %1644 = vmatprep.subr.mxu1 %v1807_v0 }
  0x31   :  { %1590 = vmatmul.mubr.f32.gmra.mxu0 %v1892_v23  ;;  %1602 = vmatmul.mubr.f32.gmra.mxu1 %v1878_v16  ;;  %v847_v16 = vand.u32 4294901760, %v846_v45  ;;  %v780_v42 = vand.u32 4294901760, %v779_v30  ;;  %v2232_v45 = vsub.f32 %v697_v24, %v2216_v35 }
  0x32   :  { %1616 = vmatpush3.msra.mxu0 %v2045_v9  ;;  %1645 = vmatpush3.msra.mxu1 %v833_v40  ;;  %v882_v40 = vand.u32 4294901760, %v881_v29 }
  0x33   :  { %1617 = vmatprep.subr.mxu0 %v1807_v0  ;;  %1646 = vmatprep.subr.mxu1 %v1807_v0 }
  0x34   :  { %1618 = vmatpush3.msra.mxu0 %v2063_v14  ;;  %1647 = vmatpush3.msra.mxu1 %v840_v49 }
  0x35   :  { %1604 = vmatprep.mubr.msk.f32.mxu1 %vm1808_vm1, %v1807_v0  ;;  %1619 = vmatprep.subr.mxu0 %v1807_v0 }
  0x36   :  { %1648 = vmatprep.subr.mxu1 %v1807_v0  ;;  %1605 = vmatmul.mubr.f32.gmra.mxu1 %v1892_v23  ;;  %v887_v23 = vand.u32 4294901760, %v2175_v2 }
  0x37   :  { %1620 = vmatpush3.msra.mxu0 %v2076_v20  ;;  %1649 = vmatpush3.msra.mxu1 %v847_v16  ;;  %v798_v16 = vand.u32 4294901760, %v2232_v45 }
  0x38   :  { %1621 = vmatprep.subr.mxu0 %v1807_v0  ;;  %1650 = vmatprep.subr.mxu1 %v1807_v0  ;;  %v888_v13 = vsub.f32 %v2175_v2, %v887_v23 }
  0x39   :  { %1622 = vmatpush3.msra.mxu0 %v2095_v27  ;;  %1651 = vmatpush3.msra.mxu1 %v854_v10  ;;  %v799_v8 = vsub.f32 %v2232_v45, %v798_v16 }
  0x3a   :  { %1623 = vmatprep.subr.mxu0 %v1807_v0  ;;  %1652 = vmatprep.subr.mxu1 %v1807_v0  ;;  %v889_v49 = vand.u32 4294901760, %v888_v13 }
  0x3b   :  { %1624 = vmatpush3.msra.mxu0 %v2111_v34  ;;  %1653 = vmatpush3.msra.mxu1 %v861_v21  ;;  %v800_v10 = vand.u32 4294901760, %v799_v8 }
  0x3c   :  { %1625 = vmatprep.subr.mxu0 %v1807_v0  ;;  %1654 = vmatprep.subr.mxu1 %v1807_v0 }
  0x3d   :  { %1626 = vmatpush3.msra.mxu0 %v2129_v41  ;;  %1655 = vmatpush3.msra.mxu1 %v868_v28 }
  0x3e   :  { %1627 = vmatprep.subr.mxu0 %v1807_v0  ;;  %1656 = vmatprep.subr.mxu1 %v1807_v0 }
  0x3f   :  { %1628 = vmatpush3.msra.mxu0 %v2149_v51  ;;  %1657 = vmatpush3.msra.mxu1 %v875_v36 }
  0x40   :  { %1629 = vmatprep.subr.mxu0 %v1807_v0  ;;  %1658 = vmatprep.subr.mxu1 %v1807_v0 }
  0x41   :  { %1630 = vmatpush3.msra.mxu0 %v2162_v59  ;;  %1631 = vmatprep.mubr.msk.f32.mxu0 %vm1808_vm1, %v1807_v0 }
  0x42   :  { %1659 = vmatpush3.msra.mxu1 %v882_v40  ;;  %1632 = vmatmul.mubr.f32.vlgmr.msra.gmra.mxu0 %v780_v42 }
  0x43   :  { %1660 = vmatprep.subr.mxu1 %v1807_v0  ;;  %1673 = vmatprep.subr.mxu0 %v1807_v0 }
  0x44   :  { %1661 = vmatpush3.msra.mxu1 %v889_v49  ;;  %1674 = vmatpush3.msra.mxu0 %v1987_v52 }
  0x45   :  { %1662 = vmatprep.subr.mxu1 %v1807_v0  ;;  %1675 = vmatprep.subr.mxu0 %v1807_v0 }
  0x46   :  { %1634 = vmatprep.mubr.msk.f32.mxu0 %vm1808_vm1, %v1807_v0  ;;  %1663 = vmatpush3.msra.mxu1 %v896_v55 }
  0x47   :  { %1664 = vmatprep.mubr.msk.f32.mxu1 %vm1808_vm1, %v1807_v0  ;;  %1676 = vmatpush3.msra.mxu0 %v2001_v56 }
  0x48   :  { %1635 = vmatmul.mubr.f32.gmra.mxu0 %v790_v63  ;;  %1665 = vmatmul.mubr.f32.vlgmr.msra.gmra.mxu1 %v2131_v44 }
  0x49   :  { %1677 = vmatprep.subr.mxu0 %v1807_v0  ;;  %1706 = vmatprep.subr.mxu1 %v1807_v0 }
  0x4a   :  { %1678 = vmatpush3.msra.mxu0 %v2033_v3  ;;  %1707 = vmatpush3.msra.mxu1 %v1964_v47 }
  0x4b   :  { %1679 = vmatprep.subr.mxu0 %v1807_v0  ;;  %1708 = vmatprep.subr.mxu1 %v1807_v0 }
  0x4c   :  { %1637 = vmatprep.mubr.msk.f32.mxu0 %vm1808_vm1, %v1807_v0  ;;  %1667 = vmatprep.mubr.msk.f32.mxu1 %vm1808_vm1, %v1807_v0 }
  0x4d   :  { %1680 = vmatpush3.msra.mxu0 %v2055_v12  ;;  %1709 = vmatpush3.msra.mxu1 %v1976_v50 }
  0x4e   :  { %1638 = vmatmul.mubr.f32.gmra.mxu0 %v800_v10  ;;  %1668 = vmatmul.mubr.f32.gmra.mxu1 %v2177_v7 }
  0x4f   :  { %1681 = vmatprep.subr.mxu0 %v1807_v0  ;;  %1710 = vmatprep.subr.mxu1 %v1807_v0 }
  0x50   :  { %1682 = vmatpush3.msra.mxu0 %v2074_v19  ;;  %1711 = vmatpush3.msra.mxu1 %v2003_v57 }
  0x51   :  { %1683 = vmatprep.subr.mxu0 %v1807_v0  ;;  %1712 = vmatprep.subr.mxu1 %v1807_v0 }
  0x52   :  { %1670 = vmatprep.mubr.msk.f32.mxu1 %vm1808_vm1, %v1807_v0  ;;  %1684 = vmatpush3.msra.mxu0 %v2093_v26 }
  0x53   :  { %1713 = vmatpush3.msra.mxu1 %v2019_v62  ;;  %1685 = vmatprep.subr.mxu0 %v1807_v0 }
  0x54   :  { %1671 = vmatmul.mubr.f32.gmra.mxu1 %v2216_v35  ;;  %1714 = vmatprep.subr.mxu1 %v1807_v0 }
  0x55   :  { %1686 = vmatpush3.msra.mxu0 %v2108_v32  ;;  %1715 = vmatpush3.msra.mxu1 %v2045_v9 }
  0x56   :  { %1687 = vmatprep.subr.mxu0 %v1807_v0  ;;  %1716 = vmatprep.subr.mxu1 %v1807_v0 }
  0x57   :  { %1688 = vmatpush3.msra.mxu0 %v2125_v38  ;;  %1717 = vmatpush3.msra.mxu1 %v2063_v14 }
  0x58   :  { %1689 = vmatprep.subr.mxu0 %v1807_v0  ;;  %1718 = vmatprep.subr.mxu1 %v1807_v0 }
  0x59   :  { %1690 = vmatpush3.msra.mxu0 %v2144_v46  ;;  %1719 = vmatpush3.msra.mxu1 %v2076_v20 }
  0x5a   :  { %1691 = vmatprep.subr.mxu0 %v1807_v0  ;;  %1720 = vmatprep.subr.mxu1 %v1807_v0 }
  0x5b   :  { %1692 = vmatpush3.msra.mxu0 %v2160_v58  ;;  %1721 = vmatpush3.msra.mxu1 %v2095_v27 }
  0x5c   :  { %1693 = vmatprep.subr.mxu0 %v1807_v0  ;;  %1722 = vmatprep.subr.mxu1 %v1807_v0 }
  0x5d   :  { %1694 = vmatpush3.msra.mxu0 %v2175_v2  ;;  %1723 = vmatpush3.msra.mxu1 %v2111_v34 }
  0x5e   :  { %1695 = vmatprep.subr.mxu0 %v1807_v0  ;;  %1724 = vmatprep.subr.mxu1 %v1807_v0 }
  0x5f   :  { %1696 = vmatpush3.msra.mxu0 %v2191_v5  ;;  %1697 = vmatprep.mubr.msk.f32.mxu0 %vm1808_vm1, %v1807_v0 }
  0x60   :  { %1725 = vmatpush3.msra.mxu1 %v2129_v41  ;;  %1698 = vmatmul.mubr.f32.vlgmr.msra.gmra.mxu0 %v2165_v60 }
  0x61   :  { %1726 = vmatprep.subr.mxu1 %v1807_v0  ;;  %1739 = vmatprep.subr.mxu0 %v1807_v0 }
  0x62   :  { %1727 = vmatpush3.msra.mxu1 %v2149_v51  ;;  %1740 = vmatpush3.msra.mxu0 %v817_v61 }
  0x63   :  { %1728 = vmatprep.subr.mxu1 %v1807_v0  ;;  %1741 = vmatprep.subr.mxu0 %v1807_v0 }
  0x64   :  { %1700 = vmatprep.mubr.msk.f32.mxu0 %vm1808_vm1, %v1807_v0  ;;  %1729 = vmatpush3.msra.mxu1 %v2162_v59 }
  0x65   :  { %1730 = vmatprep.mubr.msk.f32.mxu1 %vm1808_vm1, %v1807_v0  ;;  %1742 = vmatpush3.msra.mxu0 %v824_v4 }
  0x66   :  { %1701 = vmatmul.mubr.f32.gmra.mxu0 %v2204_v6  ;;  %1731 = vmatmul.mubr.f32.vlgmr.msra.gmra.mxu1 %v778_v17 }
  0x67   :  { %1743 = vmatprep.subr.mxu0 %v1807_v0  ;;  %1772 = vmatprep.subr.mxu1 %v1807_v0 }
  0x68   :  { %1744 = vmatpush3.msra.mxu0 %v831_v18  ;;  %1773 = vmatpush3.msra.mxu1 %v1964_v47 }
  0x69   :  { %1745 = vmatprep.subr.mxu0 %v1807_v0  ;;  %1774 = vmatprep.subr.mxu1 %v1807_v0 }
  0x6a   :  { %1703 = vmatprep.mubr.msk.f32.mxu0 %vm1808_vm1, %v1807_v0  ;;  %1733 = vmatprep.mubr.msk.f32.mxu1 %vm1808_vm1, %v1807_v0 }
  0x6b   :  { %1746 = vmatpush3.msra.mxu0 %v838_v25  ;;  %1775 = vmatpush3.msra.mxu1 %v1976_v50 }
  0x6c   :  { %1704 = vmatmul.mubr.f32.gmra.mxu0 %v2232_v45  ;;  %1734 = vmatmul.mubr.f32.gmra.mxu1 %v788_v37 }
  0x6d   :  { %1747 = vmatprep.subr.mxu0 %v1807_v0  ;;  %1776 = vmatprep.subr.mxu1 %v1807_v0 }
  0x6e   :  { %1748 = vmatpush3.msra.mxu0 %v845_v33  ;;  %1777 = vmatpush3.msra.mxu1 %v2003_v57 }
  0x6f   :  { %1749 = vmatprep.subr.mxu0 %v1807_v0  ;;  %1778 = vmatprep.subr.mxu1 %v1807_v0 }
  0x70   :  { %1736 = vmatprep.mubr.msk.f32.mxu1 %vm1808_vm1, %v1807_v0  ;;  %1750 = vmatpush3.msra.mxu0 %v852_v39 }
  0x71   :  { %1779 = vmatpush3.msra.mxu1 %v2019_v62  ;;  %1751 = vmatprep.subr.mxu0 %v1807_v0 }
  0x72   :  { %1737 = vmatmul.mubr.f32.gmra.mxu1 %v798_v16  ;;  %1780 = vmatprep.subr.mxu1 %v1807_v0 }
  0x73   :  { %1752 = vmatpush3.msra.mxu0 %v859_v48  ;;  %1781 = vmatpush3.msra.mxu1 %v2045_v9 }
  0x74   :  { %1753 = vmatprep.subr.mxu0 %v1807_v0  ;;  %1782 = vmatprep.subr.mxu1 %v1807_v0 }
  0x75   :  { %1754 = vmatpush3.msra.mxu0 %v866_v54  ;;  %1783 = vmatpush3.msra.mxu1 %v2063_v14 }
  0x76   :  { %1755 = vmatprep.subr.mxu0 %v1807_v0  ;;  %1784 = vmatprep.subr.mxu1 %v1807_v0 }
  0x77   :  { %1756 = vmatpush3.msra.mxu0 %v873_v1  ;;  %1785 = vmatpush3.msra.mxu1 %v2076_v20 }
  0x78   :  { %1757 = vmatprep.subr.mxu0 %v1807_v0  ;;  %1786 = vmatprep.subr.mxu1 %v1807_v0 }
  0x79   :  { %1758 = vmatpush3.msra.mxu0 %v880_v15  ;;  %1787 = vmatpush3.msra.mxu1 %v2095_v27 }
  0x7a   :  { %1759 = vmatprep.subr.mxu0 %v1807_v0  ;;  %1788 = vmatprep.subr.mxu1 %v1807_v0 }
  0x7b   :  { %1760 = vmatpush3.msra.mxu0 %v887_v23  ;;  %1789 = vmatpush3.msra.mxu1 %v2111_v34 }
  0x7c   :  { %1761 = vmatprep.subr.mxu0 %v1807_v0  ;;  %1790 = vmatprep.subr.mxu1 %v1807_v0 }
  0x7d   :  { %1762 = vmatpush3.msra.mxu0 %v894_v31  ;;  %1763 = vmatprep.mubr.msk.f32.mxu0 %vm1808_vm1, %v1807_v0 }
  0x7e   :  { %1791 = vmatpush3.msra.mxu1 %v2129_v41  ;;  %1764 = vmatmul.mubr.f32.vlgmr.msra.gmra.mxu0 %v2131_v44 }
  0x7f   :  { %1792 = vmatprep.subr.mxu1 %v1807_v0  ;;  %1766 = vmatprep.mubr.msk.f32.mxu0 %vm1808_vm1, %v1807_v0 }
  0x80   :  { %1793 = vmatpush3.msra.mxu1 %v2149_v51  ;;  %1796 = vmatprep.mubr.msk.f32.mxu1 %vm1808_vm1, %v1807_v0 }
  0x81   :  { %1794 = vmatprep.subr.mxu1 %v1807_v0 }
  0x82   :  { %1795 = vmatpush3.msra.mxu1 %v2162_v59  ;;  %1767 = vmatmul.mubr.f32.gmra.mxu0 %v2177_v7 }
  0x83   :  { %1797 = vmatmul.mubr.f32.vlgmr.msra.gmra.mxu1 %v2131_v44  ;;  %1769 = vmatprep.mubr.msk.f32.mxu0 %vm1808_vm1, %v1807_v0 }
  0x84   :  { %1799 = vmatprep.mubr.msk.f32.mxu1 %vm1808_vm1, %v1807_v0 }
  0x86   :  { %1770 = vmatmul.mubr.f32.gmra.mxu0 %v2216_v35 }
  0x87   :  { %1800 = vmatmul.mubr.f32.gmra.mxu1 %v2177_v7 }
  0x88   :  { %1802 = vmatprep.mubr.msk.f32.mxu1 %vm1808_vm1, %v1807_v0 }
  0x8b   :  { %1803 = vmatmul.mubr.f32.gmra.mxu1 %v2216_v35 }
  0xce   :  { %v205_v47 = vpop.f32.mrf.mxu0 }
  0xd0   :  { %v1525_v50 = vpop.f32.mrf.mxu0 }
  0xd1   :  { %v311_v52 = vpop.f32.mrf.mxu1 }
  0xd2   :  { %v215_v56 = vpop.f32.mrf.mxu0  ;;  %v312_v57 = vadd.f32 %v311_v52, %v205_v47 }
  0xd3   :  { %v1540_v61 = vpop.f32.mrf.mxu1 }
  0xd4   :  { %v1528_v62 = vpop.f32.mrf.mxu0 }
  0xd5   :  { %v317_v3 = vpop.f32.mrf.mxu1 }
  0xd6   :  { %v225_v4 = vpop.f32.mrf.mxu0  ;;  %v318_v9 = vadd.f32 %v317_v3, %v215_v56 }
  0xd7   :  { %v1543_v12 = vpop.f32.mrf.mxu1 }
  0xd8   :  { %v1531_v14 = vpop.f32.mrf.mxu0 }
  0xd9   :  { %v323_v18 = vpop.f32.mrf.mxu1 }
  0xda   :  { %v324_v19 = vadd.f32 %v323_v18, %v225_v4  ;;  %v401_v20 = vpop.f32.mrf.mxu0 }
  0xdb   :  { %v402_v25 = vadd.f32 %v401_v20, %v312_v57  ;;  %v1546_v26 = vpop.f32.mrf.mxu1 }
  0xdc   :  { %v1555_v0 = vpop.f32.mrf.mxu0 }
  0xdd   :  { %v491_v27 = vpop.f32.mrf.mxu1 }
  0xde   :  { %v408_v32 = vpop.f32.mrf.mxu0  ;;  %v492_v33 = vadd.f32 %v491_v27, %v402_v25 }
  0xdf   :  { %v409_v34 = vadd.f32 %v408_v32, %v318_v9  ;;  %v1570_v38 = vpop.f32.mrf.mxu1 }
  0xe0   :  { %v1558_v39 = vpop.f32.mrf.mxu0 }
  0xe1   :  { %v499_v41 = vpop.f32.mrf.mxu1 }
  0xe2   :  { %v415_v44 = vpop.f32.mrf.mxu0  ;;  %v500_v46 = vadd.f32 %v499_v41, %v409_v34 }
  0xe3   :  { %v416_v48 = vadd.f32 %v415_v44, %v324_v19  ;;  %v1573_v51 = vpop.f32.mrf.mxu1 }
  0xe4   :  { %v1561_v54 = vpop.f32.mrf.mxu0 }
  0xe5   :  { %v507_v58 = vpop.f32.mrf.mxu1 }
  0xe6   :  { %v508_v59 = vadd.f32 %v507_v58, %v416_v48  ;;  %v587_v60 = vpop.f32.mrf.mxu0 }
  0xe7   :  { %v588_v1 = vadd.f32 %v587_v60, %v492_v33  ;;  %v1576_v2 = vpop.f32.mrf.mxu1 }
  0xe8   :  { %v1585_v7 = vpop.f32.mrf.mxu0 }
  0xeb   :  { %v593_v11 = vpop.f32.mrf.mxu0  ;;  %v673_v5 = vpop.f32.mrf.mxu1 }
  0xec   :  { %v594_v15 = vadd.f32 %v593_v11, %v500_v46  ;;  %v674_v17 = vadd.f32 %v673_v5, %v588_v1 }
  0xed   :  { %v1588_v21 = vpop.f32.mrf.mxu0  ;;  %v1600_v22 = vpop.f32.mrf.mxu1 }
  0xf1   :  { %v599_v24 = vpop.f32.mrf.mxu0  ;;  %v679_v23 = vpop.f32.mrf.mxu1 }
  0xf2   :  { %v600_v6 = vadd.f32 %v599_v24, %v508_v59  ;;  %v680_v28 = vadd.f32 %v679_v23, %v594_v15 }
  0xf3   :  { %v1603_v29 = vpop.f32.mrf.mxu1  ;;  %v1591_v30 = vpop.f32.mrf.mxu0 }
  0xf6   :  { %v685_v31 = vpop.f32.mrf.mxu1 }
  0xf7   :  { %v686_v35 = vadd.f32 %v685_v31, %v600_v6 }
  0xf8   :  { %v1606_v36 = vpop.f32.mrf.mxu1 }
 0x102   :  { %v782_v13 = vpop.f32.mrf.mxu0 }
 0x103   :  { %v783_v14 = vadd.f32 %v782_v13, %v674_v17 }
 0x104   :  { %v1633_v37 = vpop.f32.mrf.mxu0 }
 0x108   :  { %v792_v40 = vpop.f32.mrf.mxu0  ;;  %v933_v42 = vpop.f32.mrf.mxu1 }
 0x109   :  { %v934_v18 = vadd.f32 %v933_v42, %v783_v14  ;;  %v793_v19 = vadd.f32 %v792_v40, %v680_v28 }
 0x10a   :  { %v1636_v43 = vpop.f32.mrf.mxu0  ;;  %v1666_v45 = vpop.f32.mrf.mxu1 }
 0x10e   :  { %v802_v49 = vpop.f32.mrf.mxu0  ;;  %v939_v53 = vpop.f32.mrf.mxu1 }
 0x10f   :  { %v940_v26 = vadd.f32 %v939_v53, %v793_v19  ;;  %v803_v32 = vadd.f32 %v802_v49, %v686_v35 }
 0x110   :  { %v1669_v55 = vpop.f32.mrf.mxu1  ;;  %v1639_v16 = vpop.f32.mrf.mxu0 }
 0x114   :  { %v945_v63 = vpop.f32.mrf.mxu1 }
 0x115   :  { %v946_v41 = vadd.f32 %v945_v63, %v803_v32 }
 0x116   :  { %v1672_v8 = vpop.f32.mrf.mxu1 }
 0x120   :  { %v1041_v10 = vpop.f32.mrf.mxu0 }
 0x121   :  { %v1042_v20 = vadd.f32 %v1041_v10, %v934_v18 }
 0x122   :  { %v1699_v47 = vpop.f32.mrf.mxu0 }
 0x126   :  { %v1048_v50 = vpop.f32.mrf.mxu0  ;;  %v1140_v52 = vpop.f32.mrf.mxu1 }
 0x127   :  { %v1141_v0 = vadd.f32 %v1140_v52, %v1042_v20  ;;  %v1049_v33 = vadd.f32 %v1048_v50, %v940_v26 }
 0x128   :  { %v1702_v56 = vpop.f32.mrf.mxu0  ;;  %v1732_v57 = vpop.f32.mrf.mxu1 }
 0x12c   :  { %v1055_v61 = vpop.f32.mrf.mxu0  ;;  %v1148_v62 = vpop.f32.mrf.mxu1 }
 0x12d   :  { %v1149_v44 = vadd.f32 %v1148_v62, %v1049_v33  ;;  %v1056_v54 = vadd.f32 %v1055_v61, %v946_v41 }
 0x12e   :  { %v1735_v3 = vpop.f32.mrf.mxu1  ;;  %v1705_v4 = vpop.f32.mrf.mxu0 }
 0x132   :  { %v1156_v9 = vpop.f32.mrf.mxu1 }
 0x133   :  { %v1157_v1 = vadd.f32 %v1156_v9, %v1056_v54 }
 0x134   :  { %v1738_v12 = vpop.f32.mrf.mxu1 }
 0x13e   :  { %v1263_v25 = vpop.f32.mrf.mxu0 }
 0x13f   :  { %v1264_v34 = vadd.f32 %v1263_v25, %v1141_v0 }
 0x140   :  { %v1765_v27 = vpop.f32.mrf.mxu0 }
 0x142   :  { %v1269_v38 = vpop.f32.mrf.mxu0 }
 0x143   :  { %v1358_v39 = vpop.f32.mrf.mxu1  ;;  %v1270_v58 = vadd.f32 %v1269_v38, %v1149_v44 }
 0x144   :  { %v1359_v46 = vadd.f32 %v1358_v39, %v1264_v34  ;;  %v1768_v48 = vpop.f32.mrf.mxu0 }
 0x145   :  { %v1798_v51 = vpop.f32.mrf.mxu1 }
 0x146   :  { %1374 = vst [vmem:[%s2421_s3] sm:$0xff] %v1359_v46  ;;  %v1275_v59 = vpop.f32.mrf.mxu0 }
 0x147   :  { %v1364_v60 = vpop.f32.mrf.mxu1  ;;  %v1276_v5 = vadd.f32 %v1275_v59, %v1157_v1 }
 0x148   :  { %v1365_v2 = vadd.f32 %v1364_v60, %v1270_v58  ;;  %v1771_v7 = vpop.f32.mrf.mxu0 }
 0x149   :  { %v1801_v11 = vpop.f32.mrf.mxu1 }
 0x14a   :  { %1375 = vst [vmem:[%s2421_s3 + $0x8] sm:$0xff] %v1365_v2 }
 0x14b   :  { %v1370_v15 = vpop.f32.mrf.mxu1 }
 0x14c   :  { %v1371_v17 = vadd.f32 %v1370_v15, %v1276_v5 }
 0x14d   :  { %v1804_v21 = vpop.f32.mrf.mxu1 }
 0x14e   :  { %1376 = vst [vmem:[%s2421_s3 + $0x10] sm:$0xf] %v1371_v17 }

</bundles_post_ra>
